<compile_context>
chip_gen: v6e
topology: v6e:2x2x1
jax: 0.10.0
libtpu: 0.0.40
codegen_flags: <defaults>
</compile_context>

<pallas_src>
import functools

import jax
import jax.numpy as jnp
from jax.experimental import pallas as pl
from jax.experimental.pallas import tpu as pltpu


def _make_pairs(num_fields):
    pairs = []
    for i in range(num_fields - 1):
        for j in range(i + 1, num_fields):
            pairs.append((i, j))
    return tuple(pairs)


def _round_up(x, m):
    return ((x + m - 1) // m) * m


def _pick_batch_tile(batch, bytes_per_row, *, align=8, max_tile=2048,
                     vmem_budget=16 * 1024 * 1024):
    """Largest power-of-two-ish batch tile (multiple of `align`) whose
    double-buffered input+output blocks stay well under a conservative
    scoped-VMEM budget (leaves headroom for f32 temps and v7x's 64 MiB)."""
    tb = max_tile
    while tb > align and 2 * tb * bytes_per_row > vmem_budget:
        tb //= 2
    return max(align, min(tb, _round_up(batch, align)))


def _ipn_sum_kernel(x_ref, o_ref, *, pairs, num_fields, embed_dim):
    # x_ref: (TB, F*D)  dense rows;  o_ref: (TB, P)
    x = x_ref[...]
    d = embed_dim
    fields = [x[:, f * d:(f + 1) * d] for f in range(num_fields)]  # hoisted slices
    cols = [
        jnp.sum(fields[a] * fields[b], axis=-1, keepdims=True, dtype=jnp.float32)
        for (a, b) in pairs
    ]
    o_ref[...] = jnp.concatenate(cols, axis=-1).astype(o_ref.dtype)


def _ipn_nosum_kernel(x_ref, o_ref, *, pairs, num_fields, embed_dim):
    # x_ref: (TB, F*D);  o_ref: (TB, P*D)  -- wide, store-friendly blocks
    x = x_ref[...]
    d = embed_dim
    fields = [x[:, f * d:(f + 1) * d] for f in range(num_fields)]
    prods = [fields[a] * fields[b] for (a, b) in pairs]
    o_ref[...] = jnp.concatenate(prods, axis=-1).astype(o_ref.dtype)


def inner_product_network(x, num_fields, is_sum=True):
    """Pallas implementation of InnerProductNetwork.forward."""
    B, F, D = x.shape
    assert F == num_fields, "x.shape[1] must equal num_fields"
    pairs = _make_pairs(num_fields)
    P = len(pairs)

    if P == 0:  # num_fields < 2: empty pair list, nothing to compute.
        shape = (B, 0) if is_sum else (B, 0, D)
        return jnp.zeros(shape, dtype=x.dtype)

    itemsize = jnp.dtype(x.dtype).itemsize
    out_cols = P if is_sum else P * D

    # Metadata-only flatten; no HBM copy.
    x2 = x.reshape(B, F * D)

    # Conservative per-row VMEM estimate (lane-padded) for in + out blocks.
    in_row = _round_up(F * D, 128) * itemsize
    out_row = _round_up(out_cols, 128) * max(itemsize, 4)
    tb = _pick_batch_tile(B, in_row + out_row, align=8)
    grid = (pl.cdiv(B, tb),)

    kernel_fn = _ipn_sum_kernel if is_sum else _ipn_nosum_kernel
    kernel = functools.partial(kernel_fn, pairs=pairs,
                               num_fields=num_fields, embed_dim=D)

    out = pl.pallas_call(
        kernel,
        out_shape=jax.ShapeDtypeStruct((B, out_cols), x.dtype),
        grid_spec=pl.GridSpec(
            grid=grid,
            in_specs=[pl.BlockSpec((tb, F * D), lambda i: (i, 0))],
            out_specs=pl.BlockSpec((tb, out_cols), lambda i: (i, 0)),
        ),
        compiler_params=pltpu.CompilerParams(
            dimension_semantics=("parallel",),
        ),
    )(x2)

    if is_sum:
        return out                       # (B, P)
    return out.reshape(B, P, D)          # metadata-only reshape


def _reference(x, num_fields, is_sum=True):
    pairs = _make_pairs(num_fields)
    if not pairs:
        B, _, D = x.shape
        return jnp.zeros((B, 0) if is_sum else (B, 0, D), x.dtype)
    row = jnp.asarray([i for i, _ in pairs])
    col = jnp.asarray([j for _, j in pairs])
    prod = x[:, row, :] * x[:, col, :]
    if is_sum:
        return jnp.sum(prod, axis=2)
    return prod


if __name__ == "__main__":
    key = jax.random.PRNGKey(0)
    batch, num_fields, embed_dim = 8, 4, 32
    x = jax.random.normal(key, (batch, num_fields, embed_dim), dtype=jnp.float32)

    # is_sum=True path (module default)
    out_sum = jax.block_until_ready(inner_product_network(x, num_fields, is_sum=True))
    ref_sum = _reference(x, num_fields, is_sum=True)
    assert out_sum.shape == (batch, num_fields * (num_fields - 1) // 2)
    assert jnp.allclose(out_sum, ref_sum, atol=1e-5, rtol=1e-5)

    # is_sum=False path
    out_ns = jax.block_until_ready(inner_product_network(x, num_fields, is_sum=False))
    ref_ns = _reference(x, num_fields, is_sum=False)
    assert out_ns.shape == (batch, num_fields * (num_fields - 1) // 2, embed_dim)
    assert jnp.allclose(out_ns, ref_ns, atol=1e-5, rtol=1e-5)

    # Second config: B not sublane/tile aligned (boundary-block masking) and
    # F*D not a multiple of 128 (non-aligned lane slices).
    key2 = jax.random.PRNGKey(1)
    b2, f2, d2 = 300, 5, 48
    x2 = jax.random.normal(key2, (b2, f2, d2), dtype=jnp.float32)
    o2 = jax.block_until_ready(inner_product_network(x2, f2, is_sum=True))
    r2 = _reference(x2, f2, is_sum=True)
    assert o2.shape == (b2, f2 * (f2 - 1) // 2)
    assert jnp.allclose(o2, r2, atol=1e-4, rtol=1e-4)

    o2n = jax.block_until_ready(inner_product_network(x2, f2, is_sum=False))
    r2n = _reference(x2, f2, is_sum=False)
    assert o2n.shape == (b2, f2 * (f2 - 1) // 2, d2)
    assert jnp.allclose(o2n, r2n, atol=1e-5, rtol=1e-5)

    print("KERNEL_OK")
</pallas_src>

<mosaic_0001>
module attributes {stable_mosaic.version = 11 : i64} {
  func.func @_ipn_sum_kernel(%arg0: i32, %arg1: memref<8x128xf32, #tpu.memory_space<vmem>>, %arg2: memref<8x6xf32, #tpu.memory_space<vmem>>) attributes {dimension_semantics = [#tpu.dimension_semantics<parallel>], iteration_bounds = array<i64: 1>, scalar_prefetch = 0 : i64, scratch_operands = 0 : i64, tpu.core_type = #tpu.core_type<tc>, window_params = [{transform_indices = @transform_0, window_bounds = array<i64: 8, 128>}, {transform_indices = @transform_1, window_bounds = array<i64: 8, 6>}]} {
    %c0 = arith.constant 0 : index
    %c0_0 = arith.constant 0 : index
    %0 = vector.load %arg1[%c0, %c0_0] : memref<8x128xf32, #tpu.memory_space<vmem>>, vector<8x128xf32>
    %1 = vector.extract_strided_slice %0 {offsets = [0, 0], sizes = [8, 32], strides = [1, 1]} : vector<8x128xf32> to vector<8x32xf32>
    %2 = vector.extract_strided_slice %0 {offsets = [0, 32], sizes = [8, 32], strides = [1, 1]} : vector<8x128xf32> to vector<8x32xf32>
    %3 = vector.extract_strided_slice %0 {offsets = [0, 64], sizes = [8, 32], strides = [1, 1]} : vector<8x128xf32> to vector<8x32xf32>
    %4 = vector.extract_strided_slice %0 {offsets = [0, 96], sizes = [8, 32], strides = [1, 1]} : vector<8x128xf32> to vector<8x32xf32>
    %5 = arith.mulf %1, %2 : vector<8x32xf32>
    %cst = arith.constant dense<0.000000e+00> : vector<8xf32>
    %6 = vector.multi_reduction <add>, %5, %cst [1] : vector<8x32xf32> to vector<8xf32>
    %7 = vector.shape_cast %6 : vector<8xf32> to vector<8x1xf32>
    %8 = arith.mulf %1, %3 : vector<8x32xf32>
    %cst_1 = arith.constant dense<0.000000e+00> : vector<8xf32>
    %9 = vector.multi_reduction <add>, %8, %cst_1 [1] : vector<8x32xf32> to vector<8xf32>
    %10 = vector.shape_cast %9 : vector<8xf32> to vector<8x1xf32>
    %11 = arith.mulf %1, %4 : vector<8x32xf32>
    %cst_2 = arith.constant dense<0.000000e+00> : vector<8xf32>
    %12 = vector.multi_reduction <add>, %11, %cst_2 [1] : vector<8x32xf32> to vector<8xf32>
    %13 = vector.shape_cast %12 : vector<8xf32> to vector<8x1xf32>
    %14 = arith.mulf %2, %3 : vector<8x32xf32>
    %cst_3 = arith.constant dense<0.000000e+00> : vector<8xf32>
    %15 = vector.multi_reduction <add>, %14, %cst_3 [1] : vector<8x32xf32> to vector<8xf32>
    %16 = vector.shape_cast %15 : vector<8xf32> to vector<8x1xf32>
    %17 = arith.mulf %2, %4 : vector<8x32xf32>
    %cst_4 = arith.constant dense<0.000000e+00> : vector<8xf32>
    %18 = vector.multi_reduction <add>, %17, %cst_4 [1] : vector<8x32xf32> to vector<8xf32>
    %19 = vector.shape_cast %18 : vector<8xf32> to vector<8x1xf32>
    %20 = arith.mulf %3, %4 : vector<8x32xf32>
    %cst_5 = arith.constant dense<0.000000e+00> : vector<8xf32>
    %21 = vector.multi_reduction <add>, %20, %cst_5 [1] : vector<8x32xf32> to vector<8xf32>
    %22 = vector.shape_cast %21 : vector<8xf32> to vector<8x1xf32>
    %23 = tpu.concatenate %7, %10, %13, %16, %19, %22 in 1 : vector<8x1xf32>, vector<8x1xf32>, vector<8x1xf32>, vector<8x1xf32>, vector<8x1xf32>, vector<8x1xf32> -> vector<8x6xf32>
    %c0_6 = arith.constant 0 : index
    %c0_7 = arith.constant 0 : index
    %24 = vector.load %arg2[%c0_6, %c0_7] : memref<8x6xf32, #tpu.memory_space<vmem>>, vector<8x6xf32>
    tpu.vector_store %arg2[%c0_6, %c0_7], %23 {strides = array<i32>} : memref<8x6xf32, #tpu.memory_space<vmem>>, vector<8x6xf32>,
    return
  }
  func.func @transform_0(%arg0: i32) -> (i32, i32) {
    %c0_i32 = arith.constant 0 : i32
    %c0_i32_0 = arith.constant 0 : i32
    return %arg0, %c0_i32 : i32, i32
  }
  func.func @transform_1(%arg0: i32) -> (i32, i32) {
    %c0_i32 = arith.constant 0 : i32
    %c0_i32_0 = arith.constant 0 : i32
    return %arg0, %c0_i32 : i32, i32
  }
}

</mosaic_0001>

<bundles_post_ra>
// kernel: tpu_custom_call.1
= control target key start
LH: loop header
LB: loop body
LE: loop exit
PB: predicated region body
PF: predicated region fallthrough
CT: control target
= control target key end

     0   :  { %6 = vsyncpa [#allocation3], 0  ;;  %s168_s0 = inlined_call_operand.hbm [shape: f32[8,128], index: 0, kind: input, shape index: {}]   ;;  %s169_s1 = inlined_call_operand.hbm [shape: f32[8,6], index: 1, kind: output, shape index: {}]  }
   0x1   :  { %7 = vsyncpa [#allocation4], 0  ;;  %s141_s6 = smov [#allocation2]  }
   0x2   :  { %s14_s7 = sshll.u32 %s141_s6, 4  ;;  %s15_s7 = int_to_ptr.vmem [resolvable:$true] %s14_s7 }
   0x3   :  { %s105_s8 = scalar_lea.vmem %s15_s7, 128  ;;  %p110_p1 = scmp.lt.s32.totalorder %s15_s7, %s15_s7 }
   0x4   :  { %p106_p0 = scmp.ne.s32.totalorder %s15_s7, %s105_s8  ;;  %p111_p2 = scmp.lt.s32.totalorder %s105_s8, %s105_s8 }
   0x6   :  { %p112_p3 = por %p111_p2, %p110_p1 }
   0x8   :  { %p113_p4 = pnand %p112_p3, %p106_p0 }
   0xa   :  { %116 = shalt.err (!%p113_p4)
}
   0xb   :  { %17 = dma.hbm_to_vmem [thread:$0]  %s168_s0, 128, %s15_s7, [#allocation3]  }
   0xc   :  { %137 = dma.done.wait [#allocation3], 128  }
   0xd   :  { %138 = vsyncadd [#allocation3], 4294967168  ;;  %v21_v0 = vld [vmem:[#allocation2] sm:$0xff]  ;;  %s142_s11 = smov 96   ;;  %s143_s12 = smov 32   ;;  %vm27_vm0 = vcmask 261120  }
   0xe   :  { %23 = vrot.lane.b32.xlu0 %v21_v0, %s142_s11  ;;  %38 = vrot.lane.b32.xlu1 %v21_v0, %s143_s12  ;;  %s144_s13 = smov 64   ;;  %vm65_vm1 = vcmask 7168   ;;  %vm67_vm2 = vcmask 15360   ;;  %vm69_vm3 = vcmask 23552   ;;  %vm71_vm4 = vcmask 31744   ;;  %s145_s0 = smov [#allocation5]  }
   0xf   :  { %s83_s14 = sshll.u32 %s145_s0, 4  ;;  %vm73_vm5 = vcmask 39936   ;;  %vm75_vm6 = vcmask 48128   ;;  %s84_s14 = int_to_ptr.vmem [resolvable:$true] %s83_s14 }
  0x10   :  { %s117_s15 = scalar_lea.vmem %s84_s14, 128  ;;  %p122_p6 = scmp.lt.s32.totalorder %s84_s14, %s84_s14 }
  0x11   :  { %p118_p5 = scmp.ne.s32.totalorder %s84_s14, %s117_s15  ;;  %p123_p7 = scmp.lt.s32.totalorder %s117_s15, %s117_s15 }
  0x12   :  { %31 = vrot.lane.b32.xlu0 %v21_v0, %s144_s13 }
  0x13   :  { %p124_p8 = por %p123_p7, %p122_p6 }
  0x15   :  { %p125_p9 = pnand %p124_p8, %p118_p5 }
  0x80   :  { %v24_v1 = vpop.permute.xlu0 %23  ;;  %v39_v2 = vpop.permute.xlu1 %38 }
  0x81   :  { %v26_v3 = vmul.f32 %v24_v1, %v21_v0  ;;  %v41_v4 = vmul.f32 %v39_v2, %v21_v0 }
  0x83   :  { %46 = vrot.lane.b32.xlu0 %v26_v3, %s142_s11  ;;  %v28_v5 = vsel %vm27_vm0, %v26_v3, 0.0  ;;  %v42_v8 = vsel %vm27_vm0, %v41_v4, 0.0 }
  0x84   :  { %29 = vadd.xlane.f32.xlu1 %v28_v5  ;;  %v32_v6 = vpop.permute.xlu0 %31 }
  0x85   :  { %v34_v7 = vmul.f32 %v32_v6, %v21_v0 }
  0x87   :  { %53 = vrot.lane.b32.xlu0 %v34_v7, %s142_s11  ;;  %v35_v9 = vsel %vm27_vm0, %v34_v7, 0.0 }
  0x88   :  { %43 = vadd.xlane.f32.xlu1 %v42_v8 }
  0x8b   :  { %59 = vrot.lane.b32.xlu0 %v26_v3, %s144_s13 }
  0xaa   :  { %36 = vadd.xlane.f32.xlu0 %v35_v9 }
  0xf5   :  { %v47_v10 = vpop.permute.xlu0 %46 }
  0xf6   :  { %v49_v11 = vsel %vm27_vm0, %v47_v10, 0.0 }
  0xf7   :  { %50 = vadd.xlane.f32.xlu0 %v49_v11 }
  0xf9   :  { %v54_v12 = vpop.permute.xlu0 %53 }
  0xfa   :  { %v56_v13 = vsel %vm27_vm0, %v54_v12, 0.0 }
  0xfb   :  { %57 = vadd.xlane.f32.xlu0 %v56_v13 }
  0xfd   :  { %v60_v14 = vpop.permute.xlu0 %59 }
  0xfe   :  { %v62_v15 = vsel %vm27_vm0, %v60_v14, 0.0 }
  0xff   :  { %63 = vadd.xlane.f32.xlu1 %v62_v15 }
 0x10d   :  { %v30_v17 = vpop.xlane.xlu1 %29 }
 0x111   :  { %v44_v20 = vpop.xlane.xlu1 %43 }
 0x133   :  { %v37_v16 = vpop.xlane.xlu0 %36 }
 0x134   :  { %v66_v19 = vsel %vm65_vm1, %v30_v17, %v37_v16 }
 0x135   :  { %v68_v22 = vsel %vm67_vm2, %v66_v19, %v44_v20 }
 0x180   :  { %v51_v18 = vpop.xlane.xlu0 %50 }
 0x181   :  { %v70_v23 = vsel %vm69_vm3, %v68_v22, %v51_v18 }
 0x184   :  { %v58_v21 = vpop.xlane.xlu0 %57 }
 0x185   :  { %v72_v24 = vsel %vm71_vm4, %v70_v23, %v58_v21 }
 0x188   :  { %v64_v25 = vpop.xlane.xlu1 %63 }
 0x189   :  { %v74_v26 = vsel %vm73_vm5, %v72_v24, %v64_v25 }
 0x18a   :  { %76 = vst.msk [vmem:[#allocation5] sm:$0xff] %vm75_vm6, %v74_v26 }
 0x18b   :  { %128 = shalt.err (!%p125_p9)
}
 0x18c   :  { %86 = dma.vmem_to_hbm [thread:$0]  %s84_s14, 128, %s169_s1, [#allocation4]  }
 0x18d   :  { %139 = dma.done.wait [#allocation4], 128  }
 0x18e   :  { %140 = vsyncadd [#allocation4], 4294967168 }
 0x18f   :  { %90 = vsyncpa [#allocation3], 1 }
 0x190   :  { %91 = vsyncpa [#allocation4], 1 }

</bundles_post_ra>
